<compile_context>
chip_gen: v7x
topology: tpu7x:2x2x1
jax: 0.10.0
libtpu: 0.0.40
codegen_flags: <defaults>
</compile_context>

<pallas_src>
import jax
import jax.numpy as jnp
from jax import lax
from jax.experimental import pallas as pl
from jax.experimental.pallas import tpu as pltpu


def fc_head_kernel(x_ref, w_ref, b_ref, o_ref):
    """One batch tile of the linear head, batch on the lane axis.

    x_ref: [TILE_B, 2F] bf16  concat of user/course embeddings (VMEM, pipelined)
    w_ref: [1, 2F]      bf16  fc weight (VMEM, constant block -> stays resident)
    b_ref: [1]          f32   fc bias (SMEM)
    o_ref: [1, TILE_B]  f32   logits (lane-dense output block)
    """
    # fc(cat([u, c])) in a single MXU push: contract over the 2F feature axis.
    dn = (((1,), (1,)), ((), ()))
    acc = lax.dot_general(w_ref[...], x_ref[...], dn,
                          preferred_element_type=jnp.float32)
    o_ref[...] = acc + b_ref[0]


def course_recommender_forward(user_ids, course_ids, params, *, tile_b=None):
    """Pallas-backed equivalent of CourseRecommender.forward (eval mode). Returns [B]."""
    user_table = params["user_factors"]      # [n_users,   F] bf16
    course_table = params["course_factors"]  # [n_courses, F] bf16
    fc_w = params["fc_w"]                    # [1, 2F] bf16
    fc_b = params["fc_b"]                    # [1]     f32

    batch = user_ids.shape[0]
    two_f = fc_w.shape[1]

    # Small batch: one full-extent tile (always a legal block shape).
    # Large batch: 512-lane tiles (multiple of 128 -> dense output stores).
    if tile_b is None:
        tile_b = batch if batch <= 512 else 512
    num_tiles = pl.cdiv(batch, tile_b)
    padded = num_tiles * tile_b

    uid = user_ids.astype(jnp.int32)
    cid = course_ids.astype(jnp.int32)

    # Embedding gather + concat hoisted to XLA: one contiguous [padded, 2F] slab
    # fed to the kernel through a normal pipelined VMEM BlockSpec (no per-row DMAs).
    ue = jnp.take(user_table, uid, axis=0)
    ce = jnp.take(course_table, cid, axis=0)
    x = jnp.concatenate([ue, ce], axis=1)                      # [batch, 2F] bf16
    if padded != batch:
        x = jnp.zeros((padded, two_f), x.dtype).at[:batch].set(x)

    grid_spec = pltpu.PrefetchScalarGridSpec(
        num_scalar_prefetch=0,
        grid=(num_tiles,),
        in_specs=[
            pl.BlockSpec((tile_b, two_f), lambda i: (i, 0)),   # x tile (VMEM)
            pl.BlockSpec((1, two_f), lambda i: (0, 0)),        # fc weight (resident)
            pl.BlockSpec(memory_space=pltpu.SMEM),             # bias scalar
        ],
        out_specs=pl.BlockSpec((1, tile_b), lambda i: (0, i)),
    )

    out = pl.pallas_call(
        fc_head_kernel,
        out_shape=jax.ShapeDtypeStruct((1, padded), jnp.float32),
        grid_spec=grid_spec,
        compiler_params=pltpu.CompilerParams(
            dimension_semantics=("parallel",)),
    )(x, fc_w, fc_b)

    # torch: self.fc(x).squeeze()  ->  [B]
    return out[0, :batch]


def init_params(key, n_users, n_courses, n_factors):
    """f32 params mirroring the nn.Module (Embedding: N(0,1); Linear: U(+-1/sqrt(fan_in)))."""
    k1, k2, k3, k4 = jax.random.split(key, 4)
    user_factors = jax.random.normal(k1, (n_users, n_factors), jnp.float32)
    course_factors = jax.random.normal(k2, (n_courses, n_factors), jnp.float32)
    fan_in = 2 * n_factors
    bound = 1.0 / (fan_in ** 0.5)
    fc_w = jax.random.uniform(k3, (1, fan_in), jnp.float32, -bound, bound)
    fc_b = jax.random.uniform(k4, (1,), jnp.float32, -bound, bound)
    return {"user_factors": user_factors, "course_factors": course_factors,
            "fc_w": fc_w, "fc_b": fc_b}


def prepare_params(params):
    """Kernel layout: bf16 tables + bf16 [1, 2F] weight, f32 bias."""
    return {
        "user_factors": params["user_factors"].astype(jnp.bfloat16),
        "course_factors": params["course_factors"].astype(jnp.bfloat16),
        "fc_w": params["fc_w"].astype(jnp.bfloat16),
        "fc_b": params["fc_b"].astype(jnp.float32),
    }


if __name__ == "__main__":
    n_users, n_courses, n_factors = 64, 128, 32

    key = jax.random.PRNGKey(0)
    pkey, ukey, ckey = jax.random.split(key, 3)
    params = prepare_params(init_params(pkey, n_users, n_courses, n_factors))

    def reference(uids, cids):
        # Pure-JAX reference on the same bf16-rounded params, f32 math.
        ue = jnp.take(params["user_factors"], uids, axis=0).astype(jnp.float32)
        ce = jnp.take(params["course_factors"], cids, axis=0).astype(jnp.float32)
        xx = jnp.concatenate([ue, ce], axis=1)
        w = params["fc_w"].astype(jnp.float32)
        return (xx @ w.T)[:, 0] + params["fc_b"][0]

    # Small batch: single full-extent tile.
    batch = 8
    user_ids = jax.random.randint(ukey, (batch,), 0, n_users, jnp.int32)
    course_ids = jax.random.randint(ckey, (batch,), 0, n_courses, jnp.int32)
    out = jax.block_until_ready(
        course_recommender_forward(user_ids, course_ids, params))
    assert out.shape == (batch,)
    assert jnp.allclose(out, reference(user_ids, course_ids),
                        atol=5e-3, rtol=5e-3), (out, reference(user_ids, course_ids))

    # Larger batch: exercise the multi-tile, padded, lane-dense path.
    batch2 = 300
    u2 = jax.random.randint(jax.random.PRNGKey(1), (batch2,), 0, n_users, jnp.int32)
    c2 = jax.random.randint(jax.random.PRNGKey(2), (batch2,), 0, n_courses, jnp.int32)
    out2 = jax.block_until_ready(
        course_recommender_forward(u2, c2, params, tile_b=128))
    assert out2.shape == (batch2,)
    assert jnp.allclose(out2, reference(u2, c2), atol=5e-3, rtol=5e-3)

    print("KERNEL_OK")
</pallas_src>

<mosaic_0001>
module attributes {stable_mosaic.version = 11 : i64} {
  func.func @fc_head_kernel(%arg0: i32, %arg1: memref<8x64xbf16, #tpu.memory_space<vmem>>, %arg2: memref<1x64xbf16, #tpu.memory_space<vmem>>, %arg3: memref<1xf32, #tpu.memory_space<smem>>, %arg4: memref<1x8xf32, #tpu.memory_space<vmem>>) attributes {dimension_semantics = [#tpu.dimension_semantics<parallel>], iteration_bounds = array<i64: 1>, scalar_prefetch = 0 : i64, scratch_operands = 0 : i64, tpu.core_type = #tpu.core_type<tc>, window_params = [{transform_indices = @transform_0, window_bounds = array<i64: 8, 64>}, {pipeline_mode = #tpu.pipeline_mode<synchronous>, transform_indices = @transform_1, window_bounds = array<i64: 1, 64>}, {transform_indices = @transform_2, window_bounds = array<i64: 1>}, {transform_indices = @transform_3, window_bounds = array<i64: 1, 8>}]} {
    %c0 = arith.constant 0 : index
    %c0_0 = arith.constant 0 : index
    %0 = vector.load %arg2[%c0, %c0_0] : memref<1x64xbf16, #tpu.memory_space<vmem>>, vector<1x64xbf16>
    %c0_1 = arith.constant 0 : index
    %c0_2 = arith.constant 0 : index
    %1 = vector.load %arg1[%c0_1, %c0_2] : memref<8x64xbf16, #tpu.memory_space<vmem>>, vector<8x64xbf16>
    %cst = arith.constant dense<0.000000e+00> : vector<1x8xf32>
    %2 = tpu.matmul %0, %1, %cst {dimension_numbers = #tpu.dot_dimension_numbers<[1], [1], [0], [0], [0, 0, 1, 0], [], []>} : vector<1x64xbf16>, vector<8x64xbf16>, vector<1x8xf32> -> vector<1x8xf32>
    %c0_3 = arith.constant 0 : index
    %3 = memref.load %arg3[%c0_3] : memref<1xf32, #tpu.memory_space<smem>>
    %4 = vector.broadcast %3 : f32 to vector<1x8xf32>
    %5 = arith.addf %2, %4 : vector<1x8xf32>
    %c0_4 = arith.constant 0 : index
    %c0_5 = arith.constant 0 : index
    %6 = vector.load %arg4[%c0_4, %c0_5] : memref<1x8xf32, #tpu.memory_space<vmem>>, vector<1x8xf32>
    tpu.vector_store %arg4[%c0_4, %c0_5], %5 {strides = array<i32>} : memref<1x8xf32, #tpu.memory_space<vmem>>, vector<1x8xf32>,
    return
  }
  func.func @transform_0(%arg0: i32) -> (i32, i32) {
    %c0_i32 = arith.constant 0 : i32
    %c0_i32_0 = arith.constant 0 : i32
    return %arg0, %c0_i32 : i32, i32
  }
  func.func @transform_1(%arg0: i32) -> (i32, i32) {
    %c0_i32 = arith.constant 0 : i32
    %c0_i32_0 = arith.constant 0 : i32
    %c0_i32_1 = arith.constant 0 : i32
    return %c0_i32, %c0_i32_0 : i32, i32
  }
  func.func @transform_2(%arg0: i32) -> i32 {
    %c0_i32 = arith.constant 0 : i32
    %c0_i32_0 = arith.constant 0 : i32
    return %c0_i32 : i32
  }
  func.func @transform_3(%arg0: i32) -> (i32, i32) {
    %c0_i32 = arith.constant 0 : i32
    %c0_i32_0 = arith.constant 0 : i32
    return %c0_i32, %arg0 : i32, i32
  }
}

</mosaic_0001>

<bundles_post_ra>
// kernel: tpu_custom_call.1
= control target key start
LH: loop header
LB: loop body
LE: loop exit
PB: predicated region body
PF: predicated region fallthrough
CT: control target
= control target key end

     0   :  { %9 = vsyncpa [#allocation4], 0  ;;  %s212_s0 = inlined_call_operand.hbm [shape: bf16[8,64], index: 0, kind: input, shape index: {}]   ;;  %s213_s1 = inlined_call_operand.vmem [shape: bf16[1,64], index: 1, kind: input, shape index: {}]   ;;  %s214_s2 = inlined_call_operand.<no memory space> [shape: f32[1], index: 2, kind: input, shape index: {}]   ;;  %s215_s3 = inlined_call_operand.hbm [shape: f32[1,8], index: 3, kind: output, shape index: {}]  }
   0x1   :  { %10 = vsyncpa [#allocation5], 0  ;;  %s158_s12 = smov [#allocation3]   ;;  %s110_s16 = scalar_lea.hbm %s212_s0, 64 }
   0x2   :  { %s17_s13 = sshll.u32 %s158_s12, 4  ;;  %p111_p0 = scmp.ne.s32.totalorder %s212_s0, %s110_s16  ;;  %s18_s13 = int_to_ptr.vmem [resolvable:$true] %s17_s13 }
   0x3   :  { %p114_p1 = scmp.lt.u32.totalorder %s110_s16, %s212_s0 }
   0x5   :  { %p116_p2 = pnand %p114_p1, %p111_p0 }
   0x7   :  { %119 = shalt.err (!%p116_p2)
}
   0x8   :  { %s120_s21 = scalar_lea.vmem %s18_s13, 64  ;;  %p125_p4 = scmp.lt.s32.totalorder %s18_s13, %s18_s13 }
   0x9   :  { %p121_p3 = scmp.ne.s32.totalorder %s18_s13, %s120_s21  ;;  %p126_p5 = scmp.lt.s32.totalorder %s120_s21, %s120_s21 }
   0xb   :  { %p127_p6 = por %p126_p5, %p125_p4 }
   0xd   :  { %p128_p7 = pnand %p127_p6, %p121_p3 }
   0xf   :  { %131 = shalt.err (!%p128_p7)
}
  0x10   :  { %20 = dma.hbm_to_vmem [thread:$0]  %s212_s0, 64, %s18_s13, [#allocation4]  }
  0x11   :  { %154 = dma.done.wait [#allocation4], 64  }
  0x12   :  { %155 = vsyncadd [#allocation4], 4294967232  ;;  %v159_v0 = vmov 0.0   ;;  %vm160_vm0 = vmmov 0   ;;  %vm33_vm1 = vcmask 523264   ;;  %v32_v4 = vstv %s214_s2  ;;  %s161_s0 = smov [#allocation6]  }
  0x13   :  { %100 = vmatprep.subr.bf16.mxu0 %v159_v0  ;;  %102 = vmatprep.mubr.msk.bf16.mxu0 %vm160_vm0, %v159_v0  ;;  %v30_v1 = vld [vmem:[#allocation3] sm:$0xf]  ;;  %s88_s28 = sshll.u32 %s161_s0, 4  ;;  %vm80_vm2 = vcmask 57344   ;;  %s89_s28 = int_to_ptr.vmem [resolvable:$true] %s88_s28 }
  0x14   :  { %v38_v2 = vsel %vm33_vm1, %v30_v1, 0  ;;  %v29_v3 = vld [vmem:[%s213_s1] sm:$0x1]  ;;  %s132_s29 = scalar_lea.vmem %s89_s28, 16  ;;  %s136_s30 = scalar_lea.vmem %s89_s28, 32 }
  0x15   :  { %101 = vmatpush3.bf16.xpose.msra.mxu0 %v38_v2  ;;  %p133_p8 = scmp.ne.s32.totalorder %s89_s28, %s132_s29  ;;  %p137_p9 = scmp.lt.s32.totalorder %s89_s28, %s89_s28 }
  0x16   :  { %p138_p10 = scmp.lt.s32.totalorder %s136_s30, %s132_s29 }
  0x18   :  { %p139_p11 = por %p138_p10, %p137_p9 }
  0x1a   :  { %p140_p12 = pnand %p139_p11, %p133_p8 }
  0x1c   :  { %103 = vmatmul.mubr.msk.bf16.vlgmr.msra.gmra.mrb[0].mxu0 %vm33_vm1, %v29_v3 }
  0xef   :  { %v74_v5 = vpop.f32.mrb[0].mxu0 }
  0xf0   :  { %v75_v6 = vadd.f32 %v74_v5, %v32_v4  ;;  %v104_v7 = vpop.f32.mrb[1].mxu0 }
  0xf1   :  { %v77_v8 = vpop.f32.mrb[2].mxu0 }
  0xf2   :  { %v105_v9 = vpop.f32.mrb[3].mxu0  ;;  %81 = vst.msk [vmem:[#allocation6] sm:$0x1] %vm80_vm2, %v75_v6 }
  0xf3   :  { %143 = shalt.err (!%p140_p12)
}
  0xf4   :  { %s144_s4 = scalar_lea.hbm %s215_s3, 16 }
  0xf5   :  { %p145_p13 = scmp.ne.s32.totalorder %s215_s3, %s144_s4  ;;  %p148_p0 = scmp.lt.u32.totalorder %s144_s4, %s215_s3 }
  0xf7   :  { %p150_p1 = pnand %p148_p0, %p145_p13 }
  0xf9   :  { %153 = shalt.err (!%p150_p1)
}
  0xfa   :  { %91 = dma.vmem_to_hbm [thread:$0]  %s89_s28, 16, %s215_s3, [#allocation5]  }
  0xfb   :  { %156 = dma.done.wait [#allocation5], 16  }
  0xfc   :  { %157 = vsyncadd [#allocation5], 4294967280 }
  0xfd   :  { %95 = vsyncpa [#allocation4], 1 }
  0xfe   :  { %96 = vsyncpa [#allocation5], 1 }

</bundles_post_ra>
